<compile_context>
chip_gen: v7x
topology: tpu7x:2x2x1
jax: 0.10.0
libtpu: 0.0.40
codegen_flags: <defaults>
</compile_context>

<pallas_src>
import functools

import jax
import jax.numpy as jnp
from jax import lax
from jax.experimental import pallas as pl
from jax.experimental.pallas import tpu as pltpu


# ----------------------------------------------------------------------------
# Fused kernel: per-(batch, joint-group) pointwise conv -> soft_argmax coords
# ----------------------------------------------------------------------------
def _fused_conv_softargmax_kernel(x_ref, w_ref, b_ref, wx_ref, wy_ref, o_ref,
                                  *, Jt, D, HW):
    """One grid step = one (batch, group of Jt joints).

    x_ref  : (1, C_in, HW)   bf16  image for this batch (reused across groups)
    w_ref  : (Jt*D, C_in)    bf16/f32  this group's slice of the 1x1 weight
    b_ref  : (Jt*D, 1)       f32   this group's slice of the bias
    wx_ref : (1, HW)         f32   per-pixel x-coordinate weight (w + 1)
    wy_ref : (1, HW)         f32   per-pixel y-coordinate weight (h + 1)
    o_ref  : (1, 1, Jt, 3)   f32   (x, y, z) coords for the Jt joints
    """
    x = x_ref[0]                                        # (C_in, HW)  bf16
    w = w_ref[...].astype(jnp.bfloat16)                 # no-op if pre-cast

    # 1x1 conv for Jt joints at once: (Jt*D, C_in) @ (C_in, HW), f32 accum.
    logits = jnp.dot(w, x, preferred_element_type=jnp.float32)
    logits = logits + b_ref[...]                        # (Jt*D, HW) f32

    # Per-joint view: split the sublane dim at a tile boundary (D % 8 == 0).
    l3 = logits.reshape(Jt, D, HW)                      # (Jt, D, HW)

    # Per-joint max-stabilised softmax numerator (normalisation deferred).
    m = jnp.max(l3, axis=2, keepdims=True)              # (Jt, D, 1)
    m = jnp.max(m, axis=1, keepdims=True)               # (Jt, 1, 1)
    e = jnp.exp(l3 - m)                                 # (Jt, D, HW) f32, EUP

    # Separable marginals (XLU reductions), all in f32.
    marg_hw = jnp.sum(e, axis=1)                        # (Jt, HW)
    marg_d = jnp.sum(e, axis=2)                         # (Jt, D)
    s = jnp.sum(marg_hw, axis=1, keepdims=True)         # (Jt, 1) denominator

    wx = wx_ref[...]                                    # (1, HW)
    wy = wy_ref[...]                                    # (1, HW)
    wd = (lax.broadcasted_iota(jnp.int32, (1, D), 1) + 1).astype(jnp.float32)

    x_num = jnp.sum(marg_hw * wx, axis=1, keepdims=True)   # (Jt, 1)
    y_num = jnp.sum(marg_hw * wy, axis=1, keepdims=True)   # (Jt, 1)
    z_num = jnp.sum(marg_d * wd, axis=1, keepdims=True)    # (Jt, 1)

    # Deferred normalisation: one reciprocal + 3 multiplies per joint instead
    # of D*H*W divisions.  Newton step restores full f32 accuracy.
    inv = pl.reciprocal(s, approx=True)
    inv = inv * (2.0 - s * inv)

    coord = jnp.concatenate([x_num, y_num, z_num], axis=1) * inv - 1.0  # (Jt,3)
    o_ref[0, 0] = coord.astype(o_ref.dtype)


# ----------------------------------------------------------------------------
# Joint-tile sizing (VMEM- and megacore-aware)
# ----------------------------------------------------------------------------
def _pick_joint_tile(J, D, HW, B):
    """Largest divisor Jt of J such that the per-step f32 working set stays
    small (<~24 MiB for the two live (Jt*D, HW) slabs -> safe on v7x's 64 MiB
    VMEM), the bf16 weight block keeps legal sublane tiling, and -- when B==1
    -- at least two grid steps remain so both v7x TensorCores get work."""
    row_budget = max(D, (24 * 1024 * 1024) // (2 * 4 * max(HW, 1)))
    max_jt = max(1, row_budget // D)
    if B == 1 and J >= 2:
        max_jt = min(max_jt, max(1, J // 2))
    best = 1
    for jt in range(1, J + 1):
        if J % jt != 0 or jt > max_jt:
            continue
        if (jt * D) % 16 != 0 and jt != J:
            continue                       # keep bf16 weight block tileable
        best = jt
    return best


# ----------------------------------------------------------------------------
# Wrapper
# ----------------------------------------------------------------------------
def custom_net_forward(img, weight, bias, joint_num, depth_dim, output_shape):
    """Inference forward: fused backbone stand-in + soft_argmax -> (B, J, 3)."""
    B, C_in, H, W = img.shape
    J, D = joint_num, depth_dim
    HW = H * W
    C_out = J * D
    assert (H, W) == tuple(output_shape)
    assert weight.shape == (C_out, C_in)
    assert D % 8 == 0, "depth_dim must be a multiple of 8 (f32 sublane tile)"

    Jt = _pick_joint_tile(J, D, HW, B)
    Gj = J // Jt

    x3 = img.reshape(B, C_in, HW).astype(jnp.bfloat16)   # free view of NCHW
    # Pre-cast weight to bf16 when the (Jt*D, C_in) block satisfies bf16
    # (16, lane) sublane tiling; otherwise leave f32 (kernel casts in-register).
    w_bf16_ok = ((Jt * D) % 16 == 0) or (Jt == J)
    w = weight.astype(jnp.bfloat16 if w_bf16_ok else jnp.float32)
    b2 = bias.reshape(C_out, 1).astype(jnp.float32)

    # Grid-invariant coordinate weights, hoisted out of the kernel.
    wx = jnp.tile(jnp.arange(1, W + 1, dtype=jnp.float32), H).reshape(1, HW)
    wy = jnp.repeat(jnp.arange(1, H + 1, dtype=jnp.float32), W).reshape(1, HW)

    kernel = functools.partial(_fused_conv_softargmax_kernel, Jt=Jt, D=D, HW=HW)

    # With B>=2, shard the batch axis across TensorCores (each image DMA'd
    # once per core); with B==1 shard the joint-group axis instead.
    dims = ("parallel", "arbitrary") if B >= 2 else ("arbitrary", "parallel")

    out = pl.pallas_call(
        kernel,
        out_shape=jax.ShapeDtypeStruct((B, Gj, Jt, 3), jnp.float32),
        grid=(B, Gj),
        in_specs=[
            # Image block is constant over the inner group axis -> one DMA per b.
            pl.BlockSpec((1, C_in, HW), lambda b, g: (b, 0, 0)),
            pl.BlockSpec((Jt * D, C_in), lambda b, g: (g, 0)),
            pl.BlockSpec((Jt * D, 1), lambda b, g: (g, 0)),
            pl.BlockSpec((1, HW), lambda b, g: (0, 0)),
            pl.BlockSpec((1, HW), lambda b, g: (0, 0)),
        ],
        out_specs=pl.BlockSpec((1, 1, Jt, 3), lambda b, g: (b, g, 0, 0)),
        compiler_params=pltpu.CompilerParams(
            dimension_semantics=dims,
            vmem_limit_bytes=48 * 1024 * 1024,
        ),
    )(x3, w, b2, wx, wy)
    return out.reshape(B, J, 3)


# ----------------------------------------------------------------------------
# Pure-JAX references (mirror the PyTorch code / the stand-in backbone)
# ----------------------------------------------------------------------------
def backbone_ref(img, weight, bias):
    """Stand-in 1x1 conv in pure JAX with the same bf16 input/weight rounding."""
    x = img.astype(jnp.bfloat16).astype(jnp.float32)
    w = weight.astype(jnp.bfloat16).astype(jnp.float32)
    fm = jnp.einsum("oc,bchw->bohw", w, x) + bias[None, :, None, None]
    return fm


def soft_argmax_ref(fm, joint_num, depth_dim, output_shape):
    """Line-by-line mirror of the PyTorch soft_argmax."""
    H, W = output_shape
    D, J = depth_dim, joint_num
    B = fm.shape[0]
    hm = fm.reshape(B, J, D * H * W)
    hm = jax.nn.softmax(hm, axis=2)
    hm = hm.reshape(B, J, D, H, W)
    accu_x = hm.sum(axis=(2, 3)) * jnp.arange(1, W + 1, dtype=jnp.float32)
    accu_y = hm.sum(axis=(2, 4)) * jnp.arange(1, H + 1, dtype=jnp.float32)
    accu_z = hm.sum(axis=(3, 4)) * jnp.arange(1, D + 1, dtype=jnp.float32)
    accu_x = accu_x.sum(axis=2, keepdims=True) - 1
    accu_y = accu_y.sum(axis=2, keepdims=True) - 1
    accu_z = accu_z.sum(axis=2, keepdims=True) - 1
    return jnp.concatenate((accu_x, accu_y, accu_z), axis=2)


# ----------------------------------------------------------------------------
# Main
# ----------------------------------------------------------------------------
if __name__ == "__main__":
    # Small synthetic config (cfg.joint_num, cfg.depth_dim, cfg.output_shape).
    # HW = 128 keeps the heatmap lane-dense; C_in = 32 feeds the MXU K dim.
    B, C_in = 2, 32
    joint_num, depth_dim = 4, 16
    output_shape = (8, 16)                      # (H, W) of the heatmap
    H, W = output_shape
    C_out = joint_num * depth_dim               # backbone output channels

    key = jax.random.PRNGKey(0)
    k_img, k_w, k_b = jax.random.split(key, 3)

    img = jax.random.normal(k_img, (B, C_in, H, W), dtype=jnp.float32)
    weight = 0.1 * jax.random.normal(k_w, (C_out, C_in), dtype=jnp.float32)
    bias = 0.01 * jax.random.normal(k_b, (C_out,), dtype=jnp.float32)

    fwd = jax.jit(functools.partial(
        custom_net_forward,
        joint_num=joint_num, depth_dim=depth_dim, output_shape=output_shape))
    coord = jax.block_until_ready(fwd(img, weight, bias))

    # Correctness check against the pure-JAX mirror of the torch code.
    fm_ref = backbone_ref(img, weight, bias)
    coord_ref = soft_argmax_ref(fm_ref, joint_num, depth_dim, output_shape)

    assert coord.shape == (B, joint_num, 3), coord.shape
    max_err = float(jnp.max(jnp.abs(coord - coord_ref)))
    assert jnp.allclose(coord, coord_ref, atol=2e-3, rtol=1e-3), (
        f"mismatch vs reference, max abs err = {max_err}")

    print("KERNEL_OK")
</pallas_src>

<mosaic_0001>
module attributes {stable_mosaic.version = 11 : i64} {
  func.func @_fused_conv_softargmax_kernel(%arg0: i32, %arg1: i32, %arg2: memref<1x32x128xbf16, #tpu.memory_space<vmem>>, %arg3: memref<64x32xbf16, #tpu.memory_space<vmem>>, %arg4: memref<64x1xf32, #tpu.memory_space<vmem>>, %arg5: memref<1x128xf32, #tpu.memory_space<vmem>>, %arg6: memref<1x128xf32, #tpu.memory_space<vmem>>, %arg7: memref<1x1x4x3xf32, #tpu.memory_space<vmem>>) attributes {dimension_semantics = [#tpu.dimension_semantics<parallel>, #tpu.dimension_semantics<arbitrary>], iteration_bounds = array<i64: 2, 1>, scalar_prefetch = 0 : i64, scratch_operands = 0 : i64, tpu.core_type = #tpu.core_type<tc>, window_params = [{transform_indices = @transform_0, window_bounds = array<i64: 1, 32, 128>}, {transform_indices = @transform_1, window_bounds = array<i64: 64, 32>}, {transform_indices = @transform_2, window_bounds = array<i64: 64, 1>}, {pipeline_mode = #tpu.pipeline_mode<synchronous>, transform_indices = @transform_3, window_bounds = array<i64: 1, 128>}, {pipeline_mode = #tpu.pipeline_mode<synchronous>, transform_indices = @transform_4, window_bounds = array<i64: 1, 128>}, {transform_indices = @transform_5, window_bounds = array<i64: 1, 1, 4, 3>}]} {
    %c0 = arith.constant 0 : index
    %c0_0 = arith.constant 0 : index
    %c0_1 = arith.constant 0 : index
    %0 = vector.load %arg2[%c0, %c0_0, %c0_1] : memref<1x32x128xbf16, #tpu.memory_space<vmem>>, vector<1x32x128xbf16>
    %1 = vector.shape_cast %0 : vector<1x32x128xbf16> to vector<32x128xbf16>
    %c0_2 = arith.constant 0 : index
    %c0_3 = arith.constant 0 : index
    %2 = vector.load %arg3[%c0_2, %c0_3] : memref<64x32xbf16, #tpu.memory_space<vmem>>, vector<64x32xbf16>
    %cst = arith.constant dense<0.000000e+00> : vector<64x128xf32>
    %3 = tpu.matmul %2, %1, %cst {dimension_numbers = #tpu.dot_dimension_numbers<[1], [0], [0], [1], [0, 0, 1, 1], [], []>} : vector<64x32xbf16>, vector<32x128xbf16>, vector<64x128xf32> -> vector<64x128xf32>
    %c0_4 = arith.constant 0 : index
    %c0_5 = arith.constant 0 : index
    %4 = vector.load %arg4[%c0_4, %c0_5] : memref<64x1xf32, #tpu.memory_space<vmem>>, vector<64x1xf32>
    %5 = vector.broadcast %4 : vector<64x1xf32> to vector<64x128xf32>
    %6 = arith.addf %3, %5 : vector<64x128xf32>
    %7 = vector.shape_cast %6 : vector<64x128xf32> to vector<4x16x128xf32>
    %cst_6 = arith.constant dense<0xFF800000> : vector<4x16xf32>
    %8 = vector.multi_reduction <maximumf>, %7, %cst_6 [2] : vector<4x16x128xf32> to vector<4x16xf32>
    %9 = vector.shape_cast %8 : vector<4x16xf32> to vector<4x16x1xf32>
    %cst_7 = arith.constant dense<0xFF800000> : vector<4x1xf32>
    %10 = vector.multi_reduction <maximumf>, %9, %cst_7 [1] : vector<4x16x1xf32> to vector<4x1xf32>
    %11 = vector.shape_cast %10 : vector<4x1xf32> to vector<4x1x1xf32>
    %12 = vector.broadcast %11 : vector<4x1x1xf32> to vector<4x16x128xf32>
    %13 = arith.subf %7, %12 : vector<4x16x128xf32>
    %14 = math.exp %13 : vector<4x16x128xf32>
    %cst_8 = arith.constant dense<0.000000e+00> : vector<4x128xf32>
    %15 = vector.multi_reduction <add>, %14, %cst_8 [1] : vector<4x16x128xf32> to vector<4x128xf32>
    %cst_9 = arith.constant dense<0.000000e+00> : vector<4x16xf32>
    %16 = vector.multi_reduction <add>, %14, %cst_9 [2] : vector<4x16x128xf32> to vector<4x16xf32>
    %cst_10 = arith.constant dense<0.000000e+00> : vector<4xf32>
    %17 = vector.multi_reduction <add>, %15, %cst_10 [1] : vector<4x128xf32> to vector<4xf32>
    %18 = vector.shape_cast %17 : vector<4xf32> to vector<4x1xf32>
    %c0_11 = arith.constant 0 : index
    %c0_12 = arith.constant 0 : index
    %19 = vector.load %arg5[%c0_11, %c0_12] : memref<1x128xf32, #tpu.memory_space<vmem>>, vector<1x128xf32>
    %c0_13 = arith.constant 0 : index
    %c0_14 = arith.constant 0 : index
    %20 = vector.load %arg6[%c0_13, %c0_14] : memref<1x128xf32, #tpu.memory_space<vmem>>, vector<1x128xf32>
    %21 = tpu.iota {dimensions = array<i32: 1>} : vector<1x16xi32>
    %c1_i32 = arith.constant 1 : i32
    %22 = vector.broadcast %c1_i32 : i32 to vector<1x16xi32>
    %23 = arith.addi %21, %22 : vector<1x16xi32>
    %24 = arith.sitofp %23 : vector<1x16xi32> to vector<1x16xf32>
    %25 = vector.broadcast %19 : vector<1x128xf32> to vector<4x128xf32>
    %26 = arith.mulf %15, %25 : vector<4x128xf32>
    %cst_15 = arith.constant dense<0.000000e+00> : vector<4xf32>
    %27 = vector.multi_reduction <add>, %26, %cst_15 [1] : vector<4x128xf32> to vector<4xf32>
    %28 = vector.shape_cast %27 : vector<4xf32> to vector<4x1xf32>
    %29 = vector.broadcast %20 : vector<1x128xf32> to vector<4x128xf32>
    %30 = arith.mulf %15, %29 : vector<4x128xf32>
    %cst_16 = arith.constant dense<0.000000e+00> : vector<4xf32>
    %31 = vector.multi_reduction <add>, %30, %cst_16 [1] : vector<4x128xf32> to vector<4xf32>
    %32 = vector.shape_cast %31 : vector<4xf32> to vector<4x1xf32>
    %33 = vector.broadcast %24 : vector<1x16xf32> to vector<4x16xf32>
    %34 = arith.mulf %16, %33 : vector<4x16xf32>
    %cst_17 = arith.constant dense<0.000000e+00> : vector<4xf32>
    %35 = vector.multi_reduction <add>, %34, %cst_17 [1] : vector<4x16xf32> to vector<4xf32>
    %36 = vector.shape_cast %35 : vector<4xf32> to vector<4x1xf32>
    %37 = tpu.reciprocal %18 {approx = true} : vector<4x1xf32> -> vector<4x1xf32>
    %38 = arith.mulf %18, %37 : vector<4x1xf32>
    %cst_18 = arith.constant 2.000000e+00 : f32
    %39 = vector.broadcast %cst_18 : f32 to vector<4x1xf32>
    %40 = arith.subf %39, %38 : vector<4x1xf32>
    %41 = arith.mulf %37, %40 : vector<4x1xf32>
    %42 = tpu.concatenate %28, %32, %36 in 1 : vector<4x1xf32>, vector<4x1xf32>, vector<4x1xf32> -> vector<4x3xf32>
    %43 = vector.broadcast %41 : vector<4x1xf32> to vector<4x3xf32>
    %44 = arith.mulf %42, %43 : vector<4x3xf32>
    %cst_19 = arith.constant 1.000000e+00 : f32
    %45 = vector.broadcast %cst_19 : f32 to vector<4x3xf32>
    %46 = arith.subf %44, %45 : vector<4x3xf32>
    %c0_20 = arith.constant 0 : index
    %c0_21 = arith.constant 0 : index
    %c0_22 = arith.constant 0 : index
    %c0_23 = arith.constant 0 : index
    %47 = vector.load %arg7[%c0_20, %c0_21, %c0_22, %c0_23] : memref<1x1x4x3xf32, #tpu.memory_space<vmem>>, vector<1x1x4x3xf32>
    %48 = vector.shape_cast %47 : vector<1x1x4x3xf32> to vector<4x3xf32>
    %49 = vector.shape_cast %46 : vector<4x3xf32> to vector<1x1x4x3xf32>
    tpu.vector_store %arg7[%c0_20, %c0_21, %c0_22, %c0_23], %49 {strides = array<i32>} : memref<1x1x4x3xf32, #tpu.memory_space<vmem>>, vector<1x1x4x3xf32>,
    return
  }
  func.func @transform_0(%arg0: i32, %arg1: i32) -> (i32, i32, i32) {
    %c0_i32 = arith.constant 0 : i32
    %c0_i32_0 = arith.constant 0 : i32
    %c0_i32_1 = arith.constant 0 : i32
    return %arg0, %c0_i32, %c0_i32_0 : i32, i32, i32
  }
  func.func @transform_1(%arg0: i32, %arg1: i32) -> (i32, i32) {
    %c0_i32 = arith.constant 0 : i32
    %c0_i32_0 = arith.constant 0 : i32
    return %arg1, %c0_i32 : i32, i32
  }
  func.func @transform_2(%arg0: i32, %arg1: i32) -> (i32, i32) {
    %c0_i32 = arith.constant 0 : i32
    %c0_i32_0 = arith.constant 0 : i32
    return %arg1, %c0_i32 : i32, i32
  }
  func.func @transform_3(%arg0: i32, %arg1: i32) -> (i32, i32) {
    %c0_i32 = arith.constant 0 : i32
    %c0_i32_0 = arith.constant 0 : i32
    %c0_i32_1 = arith.constant 0 : i32
    return %c0_i32, %c0_i32_0 : i32, i32
  }
  func.func @transform_4(%arg0: i32, %arg1: i32) -> (i32, i32) {
    %c0_i32 = arith.constant 0 : i32
    %c0_i32_0 = arith.constant 0 : i32
    %c0_i32_1 = arith.constant 0 : i32
    return %c0_i32, %c0_i32_0 : i32, i32
  }
  func.func @transform_5(%arg0: i32, %arg1: i32) -> (i32, i32, i32, i32) {
    %c0_i32 = arith.constant 0 : i32
    %c0_i32_0 = arith.constant 0 : i32
    %c0_i32_1 = arith.constant 0 : i32
    return %arg0, %arg1, %c0_i32, %c0_i32_0 : i32, i32, i32, i32
  }
}

</mosaic_0001>

<bundles_post_ra>
// kernel: tile.8
= control target key start
LH: loop header
LB: loop body
LE: loop exit
PB: predicated region body
PF: predicated region fallthrough
CT: control target
= control target key end

     0   :  { %s22_s0 = inlined_call_operand.vmem [shape: f32[16], index: 0, kind: input, shape index: {}]   ;;  %s23_s1 = inlined_call_operand.vmem [shape: f32[8,16], index: 1, kind: output, shape index: {}]  }
   0x1   :  { %v4_v0 = vld [vmem:[%s22_s0] ss:$0 sm:$0xff] }
   0x2   :  { %5 = vst [vmem:[%s23_s1] sm:$0xff] %v4_v0 }

// kernel: custom_net_forward.1
= control target key start
LH: loop header
LB: loop body
LE: loop exit
PB: predicated region body
PF: predicated region fallthrough
CT: control target
= control target key end

     0   :  { %s1003_s18 = smov 0   ;;  %s1005_s19 = smov 0   ;;  %s1110_s0 = inlined_call_operand.vmem [shape: bf16[2,32,128], index: 0, kind: input, shape index: {}]   ;;  %s1111_s1 = inlined_call_operand.vmem [shape: bf16[64,32], index: 1, kind: input, shape index: {}]   ;;  %s1112_s2 = inlined_call_operand.vmem [shape: f32[64,1], index: 2, kind: input, shape index: {}]   ;;  %s1113_s3 = inlined_call_operand.vmem [shape: f32[1,128], index: 3, kind: input, shape index: {}]   ;;  %s1114_s4 = inlined_call_operand.vmem [shape: f32[1,128], index: 4, kind: input, shape index: {}]   ;;  %s1115_s5 = inlined_call_operand.vmem [shape: f32[2,1,4,3], index: 5, kind: output, shape index: {}]  }
   0x1   :  { %s1007_s20 = smov 0  }
   0x2 LB: > { %s27_s21 = sadd.s32 1, %s966_s19  ;;  %p855_p0 = scmp.ge.s32.totalorder %s970_s20, 1  ;;  %s970_s20 = sphi %s1007_s20, %s15_s20   ;;  %s966_s19 = sphi %s1005_s19, %s1117_s19   ;;  %s962_s18 = sphi %s1003_s18, %s1116_s18  }
   0x3   : > { %p29_p1 = scmp.ge.s32.totalorder %s27_s21, 2  ;;  %p223_p2 = scmp.lt.s32.totalorder %s970_s20, 3 }
   0x5   : > { %s1119_s21 = smov (%p29_p1, %s27_s21), 0  ;;  %p224_p3 = pnand %p855_p0, %p223_p2 }
   0x6   : > { %p263_p4 = scmp.lt.s32.totalorder (!%p224_p3), %s962_s18, 1  ;;  %v926_v0 = vld [vmem:[%s1111_s1] sm:$0xff] (!%p224_p3)   ;;  %vm380_vm0 = vcmask (!%p224_p3), 261120   ;;  %v927_v1 = vld [vmem:[%s1111_s1 + $0x10] sm:$0xff] (!%p224_p3)   ;;  %v972_v2 = vmov (!%p224_p3), 0   ;;  %v303_v7 = vld [vmem:[%s1112_s2 + $0x18] sm:$0xff] (!%p224_p3) }
   0x7   : > { %227 = sbr.rel (%p224_p3) target bundleno = 882 (0x372), region = 40  ;;  %885 = vmatprep.mubr.msk.bf16.mxu0 (!%p224_p3), %vm380_vm0, %v926_v0  ;;  %889 = vmatprep.mubr.msk.bf16.mxu1 (!%p224_p3), %vm380_vm0, %v927_v1  ;;  %v302_v3 = vld [vmem:[%s1112_s2 + $0x10] sm:$0xff] (!%p224_p3)  ;;  %v300_v4 = vld [vmem:[%s1112_s2] sm:$0xff] (!%p224_p3)  ;;  %v301_v8 = vld [vmem:[%s1112_s2 + $0x8] sm:$0xff] (!%p224_p3)  ;;  %vm574_vm1 = vcmask (!%p224_p3), 1041409   ;;  %vm576_vm2 = vcmask (!%p224_p3), 1042434  }
   0x8   : > { %923 = vset.pattern.permute.xlu1 (!%p224_p3), %v972_v2  ;;  %922 = vset.pattern.permute.xlu0 (!%p224_p3), %v972_v2  ;;  %v928_v9 = vld [vmem:[%s1111_s1 + $0x8] sm:$0xff] (!%p224_p3)   ;;  %v929_v10 = vld [vmem:[%s1111_s1 + $0x18] sm:$0xff] (!%p224_p3)   ;;  %v304_v12 = vld [vmem:[%s1112_s2 + $0x20] sm:$0xff] (!%p224_p3)  ;;  %vm578_vm3 = vcmask (!%p224_p3), 1043459   ;;  %vm581_vm4 = vcmask (!%p224_p3), 1043456   ;;  %vm698_vm5 = vcmask (!%p224_p3), 130112  }
   0x9   : > { %320 = vperm.xlu1 (!%p224_p3), %923, %v302_v3   ;;  %310 = vperm.xlu0 (!%p224_p3), %922, %v300_v4   ;;  %v305_v11 = vld [vmem:[%s1112_s2 + $0x28] sm:$0xff] (!%p224_p3)  ;;  %v307_v13 = vld [vmem:[%s1112_s2 + $0x38] sm:$0xff] (!%p224_p3)  ;;  %v306_v14 = vld [vmem:[%s1112_s2 + $0x30] sm:$0xff] (!%p224_p3)  ;;  %vm731_vm6 = vcmask (!%p224_p3), 125952   ;;  %vm739_vm7 = vcmask (!%p224_p3), 7168   ;;  %vm741_vm8 = vcmask (!%p224_p3), 15360  }
   0xa   : > { %vm745_vm9 = vcmask (!%p224_p3), 19456  }
   0xd   : > { %325 = vperm.xlu1 (!%p224_p3), %923, %v303_v7   ;;  %315 = vperm.xlu0 (!%p224_p3), %922, %v301_v8  }
   0xe   : > { %s1121_s18 = smov (!%p263_p4, %s962_s18), 1 }
   0xf   : > { %s874_s26 = sshll.u32 %s1121_s18, 4 }
  0x10   : > { %s267_s8 = scalar_lea.vmem %s1110_s0, %s874_s26 }
  0x11   : > { %v924_v5 = vld [vmem:[%s267_s8] sm:$0xff]   ;;  %v925_v6 = vld [vmem:[%s267_s8 + $0x8] sm:$0xff]   ;;  %335 = vperm.xlu1 %923, %v305_v11   ;;  %330 = vperm.xlu0 %922, %v304_v12   ;;  %s858_s8 = sshll.u32 %s1121_s18, 2 }
  0x12   : > { %881 = vmatprep.subr.bf16.mxu0 %v924_v5  ;;  %893 = vmatprep.subr.bf16.mxu1 %v924_v5  ;;  %s286_s11 = scalar_lea.vmem %s1115_s5, %s858_s8 }
  0x13   : > { %882 = vmatpush3.bf16.msra.mxu0 %v924_v5  ;;  %895 = vmatpush3.bf16.msra.mxu1 %v924_v5 }
  0x14   : > { %883 = vmatprep.subr.bf16.mxu0 %v925_v6  ;;  %894 = vmatprep.subr.bf16.mxu1 %v925_v6 }
  0x15   : > { %345 = vperm.xlu1 %923, %v307_v13   ;;  %340 = vperm.xlu0 %922, %v306_v14  }
  0x17   : > { %884 = vmatpush3.bf16.msra.mxu0 %v925_v6  ;;  %896 = vmatpush3.bf16.msra.mxu1 %v925_v6 }
  0x1a   : > { %886 = vmatmul.mubr.msk.bf16.vlgmr.msra.gmra.mrb[0].mxu0 %vm380_vm0, %v928_v9  ;;  %890 = vmatmul.mubr.msk.bf16.vlgmr.msra.gmra.mrb[0].mxu1 %vm380_vm0, %v929_v10 }
  0x88   : > { %v311_v15 = vpop.permute.xlu0 %310  ;;  %v321_v17 = vpop.permute.xlu1 %320 }
  0x8c   : > { %v316_v16 = vpop.permute.xlu0 %315  ;;  %v326_v29 = vpop.permute.xlu1 %325 }
  0x90   : > { %v331_v18 = vpop.permute.xlu0 %330  ;;  %v336_v34 = vpop.permute.xlu1 %335 }
  0x94   : > { %v341_v32 = vpop.permute.xlu0 %340  ;;  %v346_v37 = vpop.permute.xlu1 %345 }
  0xed   : > { %v887_v19 = vpop.f32.mrb[0].mxu0  ;;  %v891_v20 = vpop.f32.mrb[0].mxu1 }
  0xee   : > { %v1067_v21 = vadd.f32 %v887_v19, %v321_v17  ;;  %v427_v22 = vpop.f32.mrb[1].mxu0  ;;  %v443_v23 = vpop.f32.mrb[1].mxu1  ;;  %v1073_v35 = vadd.f32 %v891_v20, %v341_v32 }
  0xef   : > { %v1069_v24 = vadd.f32 %v443_v23, %v331_v18  ;;  %v888_v25 = vpop.f32.mrb[2].mxu0  ;;  %v892_v26 = vpop.f32.mrb[2].mxu1  ;;  %v428_v30 = vadd.f32 %v427_v22, %v311_v15 }
  0xf0   : > { %v446_v27 = vpop.f32.mrb[3].mxu1  ;;  %462 = vmax.xlane.f32.xlu0 %v1067_v21  ;;  %v430_v28 = vpop.f32.mrb[3].mxu0  ;;  %v439_v33 = vadd.f32 %v888_v25, %v326_v29  ;;  %v455_v38 = vadd.f32 %v892_v26, %v346_v37 }
  0xf1   : > { %466 = vmax.xlane.f32.xlu1 %v1069_v24  ;;  %v431_v31 = vadd.f32 %v430_v28, %v316_v16  ;;  %v447_v36 = vadd.f32 %v446_v27, %v336_v34 }
  0xf4   : > { %458 = vmax.xlane.f32.xlu0 %v428_v30 }
  0xf5   : > { %460 = vmax.xlane.f32.xlu1 %v431_v31 }
  0xf8   : > { %464 = vmax.xlane.f32.xlu0 %v439_v33 }
  0xf9   : > { %470 = vmax.xlane.f32.xlu1 %v1073_v35 }
  0xfc   : > { %468 = vmax.xlane.f32.xlu0 %v447_v36 }
 0x100   : > { %472 = vmax.xlane.f32.xlu0 %v455_v38 }
 0x17d   : > { %v463_v39 = vpop.xlane.xlu0 %462 }
 0x17e   : > { %v467_v40 = vpop.xlane.xlu1 %466 }
 0x181   : > { %v459_v41 = vpop.xlane.xlu0 %458 }
 0x182   : > { %v461_v42 = vpop.xlane.xlu1 %460 }
 0x183   : > { %v474_v43 = vmax.f32 %v459_v41, %v461_v42 }
 0x185   : > { %v475_v44 = vrot.slane %v474_v43, 4  ;;  %v465_v45 = vpop.xlane.xlu0 %464 }
 0x186   : > { %v481_v46 = vmax.f32 %v463_v39, %v465_v45  ;;  %v471_v57 = vpop.xlane.xlu1 %470 }
 0x187   : > { %v476_v47 = vmax.f32 %v474_v43, %v475_v44 }
 0x188   : > { %v482_v48 = vrot.slane %v481_v46, 4 }
 0x189   : > { %v477_v49 = vrot.slane %v476_v47, 2  ;;  %v469_v50 = vpop.xlane.xlu0 %468 }
 0x18a   : > { %v483_v51 = vmax.f32 %v481_v46, %v482_v48  ;;  %v488_v52 = vmax.f32 %v467_v40, %v469_v50 }
 0x18b   : > { %v478_v53 = vmax.f32 %v476_v47, %v477_v49 }
 0x18c   : > { %v484_v54 = vrot.slane %v483_v51, 2  ;;  %v489_v55 = vrot.slane %v488_v52, 4 }
 0x18d   : > { %v479_v56 = vrot.slane %v478_v53, 1  ;;  %v473_v58 = vpop.xlane.xlu0 %472 }
 0x18e   : > { %v485_v59 = vmax.f32 %v483_v51, %v484_v54  ;;  %v490_v60 = vmax.f32 %v488_v52, %v489_v55  ;;  %v495_v61 = vmax.f32 %v471_v57, %v473_v58  ;;  %v870_v57 = vld [vmem:[%s1114_s4] ss:$0 sm:$0xff] }
 0x18f   : > { %v480_v62 = vmax.f32 %v478_v53, %v479_v56  ;;  %v869_v58 = vld [vmem:[%s1113_s3] ss:$0 sm:$0xff] }
 0x190   : > { %v486_v63 = vrot.slane %v485_v59, 1  ;;  %v491_v0 = vrot.slane %v490_v60, 2  ;;  %v496_v1 = vrot.slane %v495_v61, 4 }
 0x191   : > { %v502_v2 = vsub.f32 %v428_v30, %v480_v62  ;;  %v503_v3 = vsub.f32 %v431_v31, %v480_v62 }
 0x192   : > { %v487_v4 = vmax.f32 %v485_v59, %v486_v63  ;;  %v492_v5 = vmax.f32 %v490_v60, %v491_v0  ;;  %v497_v6 = vmax.f32 %v495_v61, %v496_v1 }
 0x193   : > { %v510_v7 = vmul.f32 1.442695, %v502_v2  ;;  %v512_v8 = vmul.f32 1.442695, %v503_v3 }
 0x194   : > { %v504_v9 = vsub.f32 %v1067_v21, %v487_v4  ;;  %v505_v10 = vsub.f32 %v439_v33, %v487_v4  ;;  %v493_v11 = vrot.slane %v492_v5, 1  ;;  %v498_v12 = vrot.slane %v497_v6, 2 }
 0x195   : > { %930 = vpow2.f32 %v510_v7  ;;  %v587_v4 = vlaneseq }
 0x196   : > { %932 = vpow2.f32 %v512_v8  ;;  %v514_v13 = vmul.f32 1.442695, %v504_v9  ;;  %v516_v14 = vmul.f32 1.442695, %v505_v10  ;;  %v494_v15 = vmax.f32 %v492_v5, %v493_v11 }
 0x197   : > { %v499_v16 = vmax.f32 %v497_v6, %v498_v12 }
 0x198   : > { %934 = vpow2.f32 %v514_v13  ;;  %v506_v17 = vsub.f32 %v1069_v24, %v494_v15  ;;  %v507_v18 = vsub.f32 %v447_v36, %v494_v15  ;;  %v588_v15 = vand.u32 127, %v587_v4 }
 0x199   : > { %936 = vpow2.f32 %v516_v14  ;;  %v500_v19 = vrot.slane %v499_v16, 1 }
 0x19a   : > { %v518_v20 = vmul.f32 1.442695, %v506_v17  ;;  %v520_v22 = vmul.f32 1.442695, %v507_v18 }
 0x19b   : > { %v501_v23 = vmax.f32 %v499_v16, %v500_v19 }
 0x19c   : > { %938 = vpow2.f32 %v518_v20 }
 0x19d   : > { %940 = vpow2.f32 %v520_v22  ;;  %v508_v21 = vsub.f32 %v1073_v35, %v501_v23  ;;  %v509_v25 = vsub.f32 %v455_v38, %v501_v23  ;;  %v589_v23 = vadd.s32 1, %v588_v15 }
 0x19f   : > { %v931_v26 = vpop.eup %930  ;;  %v522_v27 = vmul.f32 1.442695, %v508_v21  ;;  %v524_v28 = vmul.f32 1.442695, %v509_v25 }
 0x1a0   : > { %v933_v29 = vpop.eup %932 }
 0x1a1   : > { %942 = vpow2.f32 %v522_v27  ;;  %v526_v30 = vadd.f32 %v933_v29, %v931_v26 }
 0x1a2   : > { %v935_v31 = vpop.eup %934  ;;  %944 = vpow2.f32 %v524_v28  ;;  %v590_v28 = vcvt.s32.f32 %v589_v23 }
 0x1a3   : > { %v937_v24 = vpop.eup %936  ;;  %558 = vadd.xlane.f32.xlu1 %v935_v31  ;;  %v527_v32 = vrot.slane %v526_v30, 4 }
 0x1a4   : > { %560 = vadd.xlane.f32.xlu0 %v937_v24  ;;  %v533_v33 = vadd.f32 %v937_v24, %v935_v31 }
 0x1a5   : > { %v528_v34 = vadd.f32 %v527_v32, %v526_v30 }
 0x1a6   : > { %v939_v36 = vpop.eup %938  ;;  %v534_v37 = vrot.slane %v533_v33, 4 }
 0x1a7   : > { %v941_v39 = vpop.eup %940  ;;  %v529_v40 = vrot.slane %v528_v34, 2 }
 0x1a8   : > { %v535_v35 = vadd.f32 %v534_v37, %v533_v33  ;;  %v540_v38 = vadd.f32 %v941_v39, %v939_v36 }
 0x1a9   : > { %v530_v41 = vadd.f32 %v529_v40, %v528_v34 }
 0x1aa   : > { %v536_v42 = vrot.slane %v535_v35, 2  ;;  %v541_v43 = vrot.slane %v540_v38, 4 }
 0x1ab   : > { %v943_v44 = vpop.eup %942  ;;  %v531_v46 = vrot.slane %v530_v41, 1 }
 0x1ac   : > { %v945_v45 = vpop.eup %944  ;;  %566 = vadd.xlane.f32.xlu1 %v943_v44  ;;  %v537_v47 = vadd.f32 %v536_v42, %v535_v35  ;;  %v542_v48 = vadd.f32 %v541_v43, %v540_v38 }
 0x1ad   : > { %568 = vadd.xlane.f32.xlu0 %v945_v45  ;;  %v547_v49 = vadd.f32 %v945_v45, %v943_v44  ;;  %v532_v53 = vadd.f32 %v531_v46, %v530_v41 }
 0x1ae   : > { %v538_v50 = vrot.slane %v537_v47, 1  ;;  %v543_v51 = vrot.slane %v542_v48, 2 }
 0x1af   : > { %v548_v52 = vrot.slane %v547_v49, 4  ;;  %v621_v1 = vmul.f32 %v870_v57, %v532_v53  ;;  %v597_v6 = vmul.f32 %v869_v58, %v532_v53 }
 0x1b0   : > { %554 = vadd.xlane.f32.xlu1 %v931_v26  ;;  %v539_v54 = vadd.f32 %v538_v50, %v537_v47  ;;  %v544_v55 = vadd.f32 %v543_v51, %v542_v48 }
 0x1b1   : > { %556 = vadd.xlane.f32.xlu0 %v933_v29  ;;  %v549_v56 = vadd.f32 %v548_v52, %v547_v49  ;;  %v690_v52 = vshrl.u32 %v587_v4, 7 }
 0x1b2   : > { %v545_v59 = vrot.slane %v544_v55, 1  ;;  %v575_v60 = vsel %vm574_vm1, %v539_v54, %v532_v53  ;;  %v622_v61 = vmul.f32 %v870_v57, %v539_v54  ;;  %v598_v62 = vmul.f32 %v869_v58, %v539_v54 }
 0x1b3   : > { %v550_v63 = vrot.slane %v549_v56, 2  ;;  %v693_v53 = vadd.s32 4294967288, %v588_v15 }
 0x1b4   : > { %562 = vadd.xlane.f32.xlu1 %v939_v36  ;;  %v546_v0 = vadd.f32 %v545_v59, %v544_v55  ;;  %v629_v2 = vrot.slane %v622_v61, 7  ;;  %v605_v3 = vrot.slane %v598_v62, 7 }
 0x1b5   : > { %564 = vadd.xlane.f32.xlu0 %v941_v39  ;;  %v551_v5 = vadd.f32 %v550_v63, %v549_v56  ;;  %v696_v56 = vsub.s32 %v693_v53, %v690_v52 }
 0x1b6   : > { %v577_v7 = vsel %vm576_vm2, %v546_v0, %v575_v60  ;;  %v623_v8 = vmul.f32 %v870_v57, %v546_v0  ;;  %v630_v9 = vsel %vm574_vm1, %v629_v2, %v621_v1  ;;  %v599_v10 = vmul.f32 %v869_v58, %v546_v0 }
 0x1b7   : > { %v552_v11 = vrot.slane %v551_v5, 1  ;;  %v606_v12 = vsel %vm574_vm1, %v605_v3, %v597_v6 }
 0x1b8   : > { %v631_v13 = vrot.slane %v623_v8, 6  ;;  %v607_v14 = vrot.slane %v599_v10, 6 }
 0x1b9   : > { %v553_v16 = vadd.f32 %v552_v11, %v551_v5 }
 0x1ba   : > { %v632_v17 = vsel %vm576_vm2, %v631_v13, %v630_v9  ;;  %v608_v18 = vsel %vm576_vm2, %v607_v14, %v606_v12 }
 0x1bb   : > { %v579_v19 = vsel %vm578_vm3, %v553_v16, %v577_v7  ;;  %v624_v20 = vmul.f32 %v870_v57, %v553_v16  ;;  %v600_v22 = vmul.f32 %v869_v58, %v553_v16  ;;  %v691_v57 = vsub.s32 %v588_v15, %v690_v52 }
 0x1bc   : > { %v582_v46 = vsel %vm581_vm4, %v579_v19, 0.0 }
 0x1bd   : > { %v633_v21 = vrot.slane %v624_v20, 5  ;;  %v609_v25 = vrot.slane %v600_v22, 5 }
 0x1bf   : > { %v634_v26 = vsel %vm578_vm3, %v633_v21, %v632_v17  ;;  %v610_v27 = vsel %vm578_vm3, %v609_v25, %v608_v18 }
 0x1c0   : > { %v636_v47 = vsel %vm581_vm4, %v634_v26, 0.0  ;;  %v612_v48 = vsel %vm581_vm4, %v610_v27, 0.0 }
 0x1c5   : > { %641 = vbcast.lane.b32.xlu1 %v590_v28, 256 }
 0x1cb   : > { %645 = vbcast.lane.b32.xlu0 %v590_v28, 264 }
 0x230   : > { %v559_v29 = vpop.xlane.xlu1 %558 }
 0x231   : > { %v561_v30 = vpop.xlane.xlu0 %560 }
 0x239   : > { %v567_v31 = vpop.xlane.xlu1 %566 }
 0x23a   : > { %v569_v24 = vpop.xlane.xlu0 %568 }
 0x23d   : > { %v555_v32 = vpop.xlane.xlu1 %554 }
 0x23e   : > { %v557_v33 = vpop.xlane.xlu0 %556 }
 0x241   : > { %v563_v34 = vpop.xlane.xlu1 %562 }
 0x242   : > { %v565_v36 = vpop.xlane.xlu0 %564 }
 0x245   : > { %v642_v37 = vpop.permute.xlu1 %641 }
 0x246   : > { %v646_v39 = vpop.permute.xlu0 %645  ;;  %v651_v40 = vmul.f32 %v642_v37, %v559_v29  ;;  %v653_v38 = vmul.f32 %v642_v37, %v563_v34  ;;  %v649_v41 = vmul.f32 %v642_v37, %v555_v32  ;;  %v655_v42 = vmul.f32 %v642_v37, %v567_v31 }
 0x247   : > { %v652_v35 = vmul.f32 %v646_v39, %v561_v30  ;;  %v650_v43 = vmul.f32 %v646_v39, %v557_v33  ;;  %v654_v44 = vmul.f32 %v646_v39, %v565_v36  ;;  %v656_v45 = vmul.f32 %v646_v39, %v569_v24 }
 0x248   : > { %672 = vperm.xlu0 %922, %v651_v40  }
 0x249   : > { %675 = vperm.xlu1 %923, %v652_v35  }
 0x24c   : > { %678 = vperm.xlu0 %922, %v653_v38  }
 0x24d   : > { %666 = vperm.xlu1 %923, %v649_v41  }
 0x250   : > { %684 = vperm.xlu0 %922, %v655_v42  }
 0x251   : > { %669 = vperm.xlu1 %923, %v650_v43  }
 0x255   : > { %681 = vperm.xlu1 %923, %v654_v44  }
 0x259   : > { %687 = vperm.xlu1 %923, %v656_v45  }
 0x26f   : > { %583 = vadd.xlane.f32.xlu0 %v582_v46 }
 0x273   : > { %637 = vadd.xlane.f32.xlu0 %v636_v47 }
 0x27d   : > { %613 = vadd.xlane.f32.xlu1 %v612_v48 }
 0x2c7   : > { %v673_v50 = vpop.permute.xlu0 %672 }
 0x2c8   : > { %v676_v49 = vpop.permute.xlu1 %675  ;;  %v703_v61 = vrot.slane %v673_v50, %v691_v57 }
 0x2c9   : > { %v707_v60 = vrot.slane %v676_v49, %v696_v56 }
 0x2cb   : > { %v679_v54 = vpop.permute.xlu0 %678  ;;  %v708_v6 = vsel %vm698_vm5, %v707_v60, %v703_v61 }
 0x2cc   : > { %v667_v51 = vpop.permute.xlu1 %666  ;;  %v712_v0 = vrot.slane %v679_v54, %v691_v57 }
 0x2cd   : > { %v692_v62 = vrot.slane %v667_v51, %v691_v57 }
 0x2cf   : > { %v685_v1 = vpop.permute.xlu0 %684 }
 0x2d0   : > { %v670_v55 = vpop.permute.xlu1 %669  ;;  %v721_v7 = vrot.slane %v685_v1, %v691_v57 }
 0x2d1   : > { %v697_v58 = vrot.slane %v670_v55, %v696_v56 }
 0x2d3   : > { %v699_v2 = vsel %vm698_vm5, %v697_v58, %v692_v62 }
 0x2d4   : > { %v682_v59 = vpop.permute.xlu1 %681  ;;  %v727_v8 = vsel %vm574_vm1, %v708_v6, %v699_v2 }
 0x2d5   : > { %v716_v63 = vrot.slane %v682_v59, %v696_v56 }
 0x2d7   : > { %v717_v3 = vsel %vm698_vm5, %v716_v63, %v712_v0 }
 0x2d8   : > { %v688_v5 = vpop.permute.xlu1 %687  ;;  %v728_v10 = vsel %vm576_vm2, %v717_v3, %v727_v8 }
 0x2d9   : > { %v725_v4 = vrot.slane %v688_v5, %v696_v56 }
 0x2db   : > { %v726_v9 = vsel %vm698_vm5, %v725_v4, %v721_v7 }
 0x2dc   : > { %v729_v11 = vsel %vm578_vm3, %v726_v9, %v728_v10 }
 0x2dd   : > { %v732_v12 = vsel %vm731_vm6, %v729_v11, 0.0 }
 0x2de   : > { %733 = vadd.xlane.f32.xlu0 %v732_v12 }
 0x2fc   : > { %v584_v13 = vpop.xlane.xlu0 %583 }
 0x2fd   : > { %946 = vrcp.f32 %v584_v13 }
 0x300   : > { %v638_v17 = vpop.xlane.xlu0 %637 }
 0x307   : > { %v947_v14 = vpop.eup %946 }
 0x308   : > { %v736_v15 = vmul.f32 %v947_v14, %v584_v13 }
 0x30a   : > { %v737_v16 = vsub.f32 2.0, %v736_v15  ;;  %v614_v18 = vpop.xlane.xlu1 %613 }
 0x30b   : > { %v740_v20 = vsel %vm739_vm7, %v614_v18, %v638_v17 }
 0x30c   : > { %v738_v19 = vmul.f32 %v947_v14, %v737_v16 }
 0x36b   : > { %v734_v22 = vpop.xlane.xlu0 %733 }
 0x36c   : > { %v742_v23 = vsel %vm741_vm8, %v740_v20, %v734_v22 }
 0x36d   : > { %v743_v21 = vmul.f32 %v742_v23, %v738_v19 }
 0x36f   : > { %v871_v25 = vadd.f32 -1.0, %v743_v21 }
 0x371   : > { %746 = vst.msk [vmem:[%s286_s11] sm:$0xf] %vm745_vm9, %v871_v25 }
 0x372 PF: > { %s15_s20 = sadd.s32 1, %s970_s20   ;;  %s1116_s18 = smov %s966_s19 }
 0x373   : > { %p12_p5 = scmp.ge.s32.totalorder %s15_s20, 4   ;;  %s1117_s19 = smov %s1119_s21 }
 0x375   :  { %14 = sbr.rel (!%p12_p5) target bundleno = 2 (0x2), region = 76 }

</bundles_post_ra>
